<compile_context>
chip_gen: v6e
topology: v6e:2x2x1
jax: 0.10.0
libtpu: 0.0.40
codegen_flags: <defaults>
</compile_context>

<pallas_src>
import jax
import jax.numpy as jnp
from jax.experimental import pallas as pl
from jax.experimental.pallas import tpu as pltpu

LANE = 128
VMEM_LIMIT = 48 * 1024 * 1024            # explicit scoped-VMEM limit (see header)
FUSED_MAX_BYTES = 12 * 1024 * 1024       # "whole problem resident" threshold
FEAT_RESIDENT_MAX_BYTES = 4 * 1024 * 1024


def _round_up(x, m):
    return ((x + m - 1) // m) * m


# ---------------------------------------------------------------------------
# Kernels
# ---------------------------------------------------------------------------
def fused_gcn_kernel(a_ref, x_ref, w1_ref, b1_ref, w2_ref, b2_ref,
                     w3_ref, b3_ref, o_ref):
    """Whole forward pass in one call (small graphs, everything VMEM-resident).

        out = relu(A @ relu(A @ (X W1) + b1) @ W2 + b2) @ W3 + b3

    A is bf16; both aggregation matmuls take bf16 operands with f32
    accumulation; the (tiny) weight matmuls stay f32.
    """
    a = a_ref[...]                                            # bf16 (n, n)
    xw1 = jnp.dot(x_ref[...], w1_ref[...],
                  preferred_element_type=jnp.float32)
    h1 = jnp.dot(a, xw1.astype(jnp.bfloat16),
                 preferred_element_type=jnp.float32) + b1_ref[...]
    h1 = jnp.maximum(h1, 0.0)
    agg2 = jnp.dot(a, h1.astype(jnp.bfloat16),
                   preferred_element_type=jnp.float32)
    h2 = jnp.dot(agg2, w2_ref[...],
                 preferred_element_type=jnp.float32) + b2_ref[...]
    h2 = jnp.maximum(h2, 0.0)
    out = jnp.dot(h2, w3_ref[...],
                  preferred_element_type=jnp.float32) + b3_ref[...]
    o_ref[...] = out.astype(o_ref.dtype)


def xw_kernel(x_ref, w_ref, o_ref):
    """Feature transform X @ W1 (tiled over node rows, W1 VMEM-resident)."""
    o_ref[...] = jnp.dot(x_ref[...], w_ref[...],
                         preferred_element_type=jnp.float32).astype(o_ref.dtype)


def _feat_block(f_ref, k, t_k, resident):
    """k-th (t_k)-row slice of the aggregation operand.

    resident=True  : f_ref holds the full (n_pad, f) matrix in VMEM; slice it.
    resident=False : f_ref already is the k-th streamed (t_k, f) block.
    """
    if resident:
        return f_ref[pl.ds(pl.multiple_of(k * t_k, t_k), t_k), :]
    return f_ref[...]


def make_layer1_kernel(t_k, resident, post_weight):
    """h1 = relu(A @ F [@ W1] + b1); A @ F accumulated over grid axis 1."""

    def body(a_ref, f_ref, w_ref, b_ref, o_ref, acc_ref):
        k = pl.program_id(1)

        @pl.when(k == 0)
        def _():
            acc_ref[...] = jnp.zeros_like(acc_ref)

        acc_ref[...] += jnp.dot(a_ref[...],
                                _feat_block(f_ref, k, t_k, resident),
                                preferred_element_type=jnp.float32)

        @pl.when(k == pl.num_programs(1) - 1)
        def _():
            h = acc_ref[...]
            if w_ref is not None:          # weight NOT pre-applied -> epilogue
                h = jnp.dot(h, w_ref[...], preferred_element_type=jnp.float32)
            o_ref[...] = jnp.maximum(h + b_ref[...], 0.0).astype(o_ref.dtype)

    if post_weight:
        def kernel(a_ref, f_ref, w_ref, b_ref, o_ref, acc_ref):
            body(a_ref, f_ref, w_ref, b_ref, o_ref, acc_ref)
    else:
        def kernel(a_ref, f_ref, b_ref, o_ref, acc_ref):
            body(a_ref, f_ref, None, b_ref, o_ref, acc_ref)
    return kernel


def make_layer2_kernel(t_k, resident):
    """out = relu((A @ H1) @ W2 + b2) @ W3 + b3 (layer 2 fused w/ classifier)."""

    def kernel(a_ref, h_ref, w2_ref, b2_ref, w3_ref, b3_ref, o_ref, acc_ref):
        k = pl.program_id(1)

        @pl.when(k == 0)
        def _():
            acc_ref[...] = jnp.zeros_like(acc_ref)

        acc_ref[...] += jnp.dot(a_ref[...],
                                _feat_block(h_ref, k, t_k, resident),
                                preferred_element_type=jnp.float32)

        @pl.when(k == pl.num_programs(1) - 1)
        def _():
            h2 = jnp.dot(acc_ref[...], w2_ref[...],
                         preferred_element_type=jnp.float32) + b2_ref[...]
            h2 = jnp.maximum(h2, 0.0)
            out = jnp.dot(h2, w3_ref[...],
                          preferred_element_type=jnp.float32) + b3_ref[...]
            o_ref[...] = out.astype(o_ref.dtype)

    return kernel


# ---------------------------------------------------------------------------
# Wrapper
# ---------------------------------------------------------------------------
def build_norm_adj(edge_index, num_nodes):
    """Dense A_hat = D^-1/2 (A + I) D^-1/2 (plain-JAX wrapper glue, no kernel).

    Duplicate edges scatter-ADD (matching PyG gcn_norm); self loops are forced
    to weight 1 (add_remaining_self_loops with edge_weight=None).
    """
    src, dst = edge_index
    a = jnp.zeros((num_nodes, num_nodes), jnp.float32)
    a = a.at[dst, src].add(1.0)
    eye = jnp.eye(num_nodes, dtype=jnp.float32)
    a = a * (1.0 - eye) + eye
    deg = a.sum(axis=1)
    d_inv_sqrt = jnp.where(deg > 0.0, jax.lax.rsqrt(deg), 0.0)
    return d_inv_sqrt[:, None] * a * d_inv_sqrt[None, :]


def _pad2(arr, rows, cols):
    out = jnp.zeros((rows, cols), arr.dtype)
    return out.at[:arr.shape[0], :arr.shape[1]].set(arr)


def gcn_forward(x, edge_index, params, *, force_tiled=False,
                feat_resident_max_bytes=FEAT_RESIDENT_MAX_BYTES):
    w1, b1, w2, b2, w3, b3 = params
    n, in_dim = x.shape
    hidden = w1.shape[1]
    out_dim = w3.shape[1]

    f_in = _round_up(in_dim, LANE)
    f_h = _round_up(hidden, LANE)
    f_out = _round_up(out_dim, LANE)      # lane-dense classifier store

    a_hat = build_norm_adj(edge_index, n)

    w1_p = _pad2(w1, f_in, f_h)
    b1_p = _pad2(b1.reshape(1, -1), 1, f_h)
    w2_p = _pad2(w2, f_h, f_h)
    b2_p = _pad2(b2.reshape(1, -1), 1, f_h)
    w3_p = _pad2(w3, f_h, f_out)
    b3_p = _pad2(b3.reshape(1, -1), 1, f_out)

    # ---- fused single-call path (whole problem VMEM-resident) -------------
    n16 = _round_up(n, 16)                # bf16-sublane friendly; NOT 128
    fused_bytes = (2 * n16 * n16                              # A (bf16)
                   + 4 * n16 * (f_in + 3 * f_h + f_out)       # x, temps, out
                   + 4 * (f_in * f_h + f_h * f_h + f_h * f_out))
    if (not force_tiled) and fused_bytes <= FUSED_MAX_BYTES:
        n_pad = n16
        a_p = _pad2(a_hat.astype(jnp.bfloat16), n_pad, n_pad)
        x_p = _pad2(x.astype(jnp.float32), n_pad, f_in)

        def whole(arr):
            return pl.BlockSpec(arr.shape, lambda i: (0, 0))

        out_p = pl.pallas_call(
            fused_gcn_kernel,
            out_shape=jax.ShapeDtypeStruct((n_pad, f_out), jnp.float32),
            grid_spec=pltpu.PrefetchScalarGridSpec(
                num_scalar_prefetch=0,
                grid=(1,),
                in_specs=[whole(a_p), whole(x_p), whole(w1_p), whole(b1_p),
                          whole(w2_p), whole(b2_p), whole(w3_p), whole(b3_p)],
                out_specs=pl.BlockSpec((n_pad, f_out), lambda i: (0, 0))),
            compiler_params=pltpu.CompilerParams(
                dimension_semantics=("arbitrary",),
                vmem_limit_bytes=VMEM_LIMIT),
        )(a_p, x_p, w1_p, b1_p, w2_p, b2_p, w3_p, b3_p)
        return jnp.squeeze(out_p[:n, :out_dim])

    # ---- tiled two-call path ----------------------------------------------
    t = 256
    n_pad = max(_round_up(n, t), 2 * t)   # >= 2 row tiles -> both v7x TCs busy
    grid = (n_pad // t, n_pad // t)       # (rows parallel, reduction last)
    cparams = pltpu.CompilerParams(
        dimension_semantics=("parallel", "arbitrary"),
        vmem_limit_bytes=VMEM_LIMIT)

    a_p = _pad2(a_hat.astype(jnp.bfloat16), n_pad, n_pad)
    a_spec = pl.BlockSpec((t, t), lambda i, k: (i, k))

    def const_spec(shape):
        # TODO(synk): pipeline_mode=pl.Buffered(1) would drop the redundant
        # second buffer for these never-refetched weights/biases.
        return pl.BlockSpec(shape, lambda i, k: (0, 0))

    def row_out_spec(f):
        return pl.BlockSpec((t, f), lambda i, k: (i, 0))

    def feat_spec(width, resident):
        if resident:                      # whole operand stays VMEM-resident
            return pl.BlockSpec((n_pad, width), lambda i, k: (0, 0))
        return pl.BlockSpec((t, width), lambda i, k: (k, 0))

    # Layer 1: apply W1 before aggregation when it shrinks the matmul width.
    pre_apply_w1 = f_in > f_h
    if pre_apply_w1:
        x_p = _pad2(x.astype(jnp.float32), n_pad, f_in)
        feat1 = pl.pallas_call(
            xw_kernel,
            out_shape=jax.ShapeDtypeStruct((n_pad, f_h), jnp.bfloat16),
            grid_spec=pltpu.PrefetchScalarGridSpec(
                num_scalar_prefetch=0,
                grid=(n_pad // t,),
                in_specs=[pl.BlockSpec((t, f_in), lambda i: (i, 0)),
                          pl.BlockSpec((f_in, f_h), lambda i: (0, 0))],
                out_specs=pl.BlockSpec((t, f_h), lambda i: (i, 0))),
            compiler_params=pltpu.CompilerParams(
                dimension_semantics=("parallel",),
                vmem_limit_bytes=VMEM_LIMIT),
        )(x_p, w1_p)
        f1_width = f_h
    else:
        feat1 = _pad2(x.astype(jnp.bfloat16), n_pad, f_in)
        f1_width = f_in

    res1 = n_pad * f1_width * 2 <= feat_resident_max_bytes
    kernel1 = make_layer1_kernel(t, res1, post_weight=not pre_apply_w1)
    in_specs1 = [a_spec, feat_spec(f1_width, res1)]
    args1 = [a_p, feat1]
    if not pre_apply_w1:
        in_specs1.append(const_spec((f_in, f_h)))
        args1.append(w1_p)
    in_specs1.append(const_spec((1, f_h)))
    args1.append(b1_p)

    h1 = pl.pallas_call(
        kernel1,
        out_shape=jax.ShapeDtypeStruct((n_pad, f_h), jnp.bfloat16),
        grid_spec=pltpu.PrefetchScalarGridSpec(
            num_scalar_prefetch=0,
            grid=grid,
            in_specs=in_specs1,
            out_specs=row_out_spec(f_h),
            scratch_shapes=[pltpu.VMEM((t, f1_width), jnp.float32)]),
        compiler_params=cparams,
    )(*args1)

    # Layer 2 fused with the classifier.
    res2 = n_pad * f_h * 2 <= feat_resident_max_bytes
    out_p = pl.pallas_call(
        make_layer2_kernel(t, res2),
        out_shape=jax.ShapeDtypeStruct((n_pad, f_out), jnp.float32),
        grid_spec=pltpu.PrefetchScalarGridSpec(
            num_scalar_prefetch=0,
            grid=grid,
            in_specs=[a_spec, feat_spec(f_h, res2),
                      const_spec((f_h, f_h)), const_spec((1, f_h)),
                      const_spec((f_h, f_out)), const_spec((1, f_out))],
            out_specs=row_out_spec(f_out),
            scratch_shapes=[pltpu.VMEM((t, f_h), jnp.float32)]),
        compiler_params=cparams,
    )(a_p, h1, w2_p, b2_p, w3_p, b3_p)

    # Strip padding; PyTorch .squeeze() removes all size-1 dims.
    return jnp.squeeze(out_p[:n, :out_dim])


def init_params(key, in_dim, hidden_dim, out_dim):
    # Deterministic synthetic init (uniform, roughly nn.Linear scale).
    # Weights stored as (in_features, out_features), i.e. transposed vs torch.
    ks = jax.random.split(key, 6)

    def lin(kw, kb, fan_in, fan_out):
        bound = float(fan_in) ** -0.5
        w = jax.random.uniform(kw, (fan_in, fan_out), jnp.float32, -bound, bound)
        b = jax.random.uniform(kb, (fan_out,), jnp.float32, -bound, bound)
        return w, b

    w1, b1 = lin(ks[0], ks[1], in_dim, hidden_dim)
    w2, b2 = lin(ks[2], ks[3], hidden_dim, hidden_dim)
    w3, b3 = lin(ks[4], ks[5], hidden_dim, out_dim)
    return (w1, b1, w2, b2, w3, b3)


def make_ring_graph(num_nodes, chords):
    """Deterministic undirected graph: ring + chords, both directions."""
    ring_src = jnp.arange(num_nodes, dtype=jnp.int32)
    ring_dst = (ring_src + 1) % num_nodes
    c_src = jnp.array([c[0] for c in chords], dtype=jnp.int32)
    c_dst = jnp.array([c[1] for c in chords], dtype=jnp.int32)
    src = jnp.concatenate([ring_src, ring_dst, c_src, c_dst])
    dst = jnp.concatenate([ring_dst, ring_src, c_dst, c_src])
    return jnp.stack([src, dst])


def reference_forward(x, edge_index, params):
    w1, b1, w2, b2, w3, b3 = params
    a_hat = build_norm_adj(edge_index, x.shape[0])
    h = jnp.maximum(a_hat @ x @ w1 + b1, 0.0)
    h = jnp.maximum(a_hat @ h @ w2 + b2, 0.0)
    return jnp.squeeze(h @ w3 + b3)


if __name__ == "__main__":
    key = jax.random.PRNGKey(0)

    configs = [
        # (name, n, in_dim, hidden, out_dim, chords, forward kwargs)
        ("fused_small", 34, 16, 32, 1,
         [(0, 17), (5, 25), (10, 30), (20, 33), (0, 17)],   # incl. duplicate edge
         dict()),
        ("tiled_preapply_resident", 600, 256, 64, 8,
         [(0, 300), (50, 450), (123, 511), (7, 599)],
         dict(force_tiled=True)),
        ("tiled_postweight_streamed", 300, 48, 160, 1,
         [(0, 150), (20, 280)],
         dict(force_tiled=True, feat_resident_max_bytes=0)),
    ]

    for name, n, in_dim, hidden, out_dim, chords, kwargs in configs:
        key, k_x, k_p = jax.random.split(key, 3)
        x = jax.random.normal(k_x, (n, in_dim), jnp.float32)
        edge_index = make_ring_graph(n, chords)
        params = init_params(k_p, in_dim, hidden, out_dim)

        out = jax.block_until_ready(gcn_forward(x, edge_index, params, **kwargs))
        ref = reference_forward(x, edge_index, params)

        assert out.shape == ref.shape, (name, out.shape, ref.shape)
        err = float(jnp.max(jnp.abs(out - ref)))
        # bf16 aggregation operands -> tolerance looser than a pure-f32 check.
        assert jnp.allclose(out, ref, atol=5e-2, rtol=5e-2), (name, err)

    print("KERNEL_OK")
</pallas_src>

<mosaic_0001>
module attributes {stable_mosaic.version = 11 : i64} {
  func.func @fused_gcn_kernel(%arg0: i32, %arg1: memref<48x48xbf16, #tpu.memory_space<vmem>>, %arg2: memref<48x128xf32, #tpu.memory_space<vmem>>, %arg3: memref<128x128xf32, #tpu.memory_space<vmem>>, %arg4: memref<1x128xf32, #tpu.memory_space<vmem>>, %arg5: memref<128x128xf32, #tpu.memory_space<vmem>>, %arg6: memref<1x128xf32, #tpu.memory_space<vmem>>, %arg7: memref<128x128xf32, #tpu.memory_space<vmem>>, %arg8: memref<1x128xf32, #tpu.memory_space<vmem>>, %arg9: memref<48x128xf32, #tpu.memory_space<vmem>>) attributes {dimension_semantics = [#tpu.dimension_semantics<arbitrary>], iteration_bounds = array<i64: 1>, scalar_prefetch = 0 : i64, scratch_operands = 0 : i64, tpu.core_type = #tpu.core_type<tc>, window_params = [{pipeline_mode = #tpu.pipeline_mode<synchronous>, transform_indices = @transform_0, window_bounds = array<i64: 48, 48>}, {pipeline_mode = #tpu.pipeline_mode<synchronous>, transform_indices = @transform_1, window_bounds = array<i64: 48, 128>}, {pipeline_mode = #tpu.pipeline_mode<synchronous>, transform_indices = @transform_2, window_bounds = array<i64: 128, 128>}, {pipeline_mode = #tpu.pipeline_mode<synchronous>, transform_indices = @transform_3, window_bounds = array<i64: 1, 128>}, {pipeline_mode = #tpu.pipeline_mode<synchronous>, transform_indices = @transform_4, window_bounds = array<i64: 128, 128>}, {pipeline_mode = #tpu.pipeline_mode<synchronous>, transform_indices = @transform_5, window_bounds = array<i64: 1, 128>}, {pipeline_mode = #tpu.pipeline_mode<synchronous>, transform_indices = @transform_6, window_bounds = array<i64: 128, 128>}, {pipeline_mode = #tpu.pipeline_mode<synchronous>, transform_indices = @transform_7, window_bounds = array<i64: 1, 128>}, {pipeline_mode = #tpu.pipeline_mode<synchronous>, transform_indices = @transform_8, window_bounds = array<i64: 48, 128>}]} {
    %c0 = arith.constant 0 : index
    %c0_0 = arith.constant 0 : index
    %0 = vector.load %arg1[%c0, %c0_0] : memref<48x48xbf16, #tpu.memory_space<vmem>>, vector<48x48xbf16>
    %c0_1 = arith.constant 0 : index
    %c0_2 = arith.constant 0 : index
    %1 = vector.load %arg2[%c0_1, %c0_2] : memref<48x128xf32, #tpu.memory_space<vmem>>, vector<48x128xf32>
    %c0_3 = arith.constant 0 : index
    %c0_4 = arith.constant 0 : index
    %2 = vector.load %arg3[%c0_3, %c0_4] : memref<128x128xf32, #tpu.memory_space<vmem>>, vector<128x128xf32>
    %cst = arith.constant dense<0.000000e+00> : vector<48x128xf32>
    %3 = tpu.matmul %1, %2, %cst {dimension_numbers = #tpu.dot_dimension_numbers<[1], [0], [0], [1], [0, 0, 1, 1], [], []>} : vector<48x128xf32>, vector<128x128xf32>, vector<48x128xf32> -> vector<48x128xf32>
    %4 = arith.truncf %3 : vector<48x128xf32> to vector<48x128xbf16>
    %cst_5 = arith.constant dense<0.000000e+00> : vector<48x128xf32>
    %5 = tpu.matmul %0, %4, %cst_5 {dimension_numbers = #tpu.dot_dimension_numbers<[1], [0], [0], [1], [0, 0, 1, 1], [], []>} : vector<48x48xbf16>, vector<48x128xbf16>, vector<48x128xf32> -> vector<48x128xf32>
    %c0_6 = arith.constant 0 : index
    %c0_7 = arith.constant 0 : index
    %6 = vector.load %arg4[%c0_6, %c0_7] : memref<1x128xf32, #tpu.memory_space<vmem>>, vector<1x128xf32>
    %7 = vector.broadcast %6 : vector<1x128xf32> to vector<48x128xf32>
    %8 = arith.addf %5, %7 : vector<48x128xf32>
    %cst_8 = arith.constant 0.000000e+00 : f32
    %9 = vector.broadcast %cst_8 : f32 to vector<48x128xf32>
    %10 = arith.maximumf %8, %9 : vector<48x128xf32>
    %11 = arith.truncf %10 : vector<48x128xf32> to vector<48x128xbf16>
    %cst_9 = arith.constant dense<0.000000e+00> : vector<48x128xf32>
    %12 = tpu.matmul %0, %11, %cst_9 {dimension_numbers = #tpu.dot_dimension_numbers<[1], [0], [0], [1], [0, 0, 1, 1], [], []>} : vector<48x48xbf16>, vector<48x128xbf16>, vector<48x128xf32> -> vector<48x128xf32>
    %c0_10 = arith.constant 0 : index
    %c0_11 = arith.constant 0 : index
    %13 = vector.load %arg5[%c0_10, %c0_11] : memref<128x128xf32, #tpu.memory_space<vmem>>, vector<128x128xf32>
    %cst_12 = arith.constant dense<0.000000e+00> : vector<48x128xf32>
    %14 = tpu.matmul %12, %13, %cst_12 {dimension_numbers = #tpu.dot_dimension_numbers<[1], [0], [0], [1], [0, 0, 1, 1], [], []>} : vector<48x128xf32>, vector<128x128xf32>, vector<48x128xf32> -> vector<48x128xf32>
    %c0_13 = arith.constant 0 : index
    %c0_14 = arith.constant 0 : index
    %15 = vector.load %arg6[%c0_13, %c0_14] : memref<1x128xf32, #tpu.memory_space<vmem>>, vector<1x128xf32>
    %16 = vector.broadcast %15 : vector<1x128xf32> to vector<48x128xf32>
    %17 = arith.addf %14, %16 : vector<48x128xf32>
    %cst_15 = arith.constant 0.000000e+00 : f32
    %18 = vector.broadcast %cst_15 : f32 to vector<48x128xf32>
    %19 = arith.maximumf %17, %18 : vector<48x128xf32>
    %c0_16 = arith.constant 0 : index
    %c0_17 = arith.constant 0 : index
    %20 = vector.load %arg7[%c0_16, %c0_17] : memref<128x128xf32, #tpu.memory_space<vmem>>, vector<128x128xf32>
    %cst_18 = arith.constant dense<0.000000e+00> : vector<48x128xf32>
    %21 = tpu.matmul %19, %20, %cst_18 {dimension_numbers = #tpu.dot_dimension_numbers<[1], [0], [0], [1], [0, 0, 1, 1], [], []>} : vector<48x128xf32>, vector<128x128xf32>, vector<48x128xf32> -> vector<48x128xf32>
    %c0_19 = arith.constant 0 : index
    %c0_20 = arith.constant 0 : index
    %22 = vector.load %arg8[%c0_19, %c0_20] : memref<1x128xf32, #tpu.memory_space<vmem>>, vector<1x128xf32>
    %23 = vector.broadcast %22 : vector<1x128xf32> to vector<48x128xf32>
    %24 = arith.addf %21, %23 : vector<48x128xf32>
    %c0_21 = arith.constant 0 : index
    %c0_22 = arith.constant 0 : index
    %25 = vector.load %arg9[%c0_21, %c0_22] : memref<48x128xf32, #tpu.memory_space<vmem>>, vector<48x128xf32>
    tpu.vector_store %arg9[%c0_21, %c0_22], %24 {strides = array<i32>} : memref<48x128xf32, #tpu.memory_space<vmem>>, vector<48x128xf32>,
    return
  }
  func.func @transform_0(%arg0: i32) -> (i32, i32) {
    %c0_i32 = arith.constant 0 : i32
    %c0_i32_0 = arith.constant 0 : i32
    %c0_i32_1 = arith.constant 0 : i32
    return %c0_i32, %c0_i32_0 : i32, i32
  }
  func.func @transform_1(%arg0: i32) -> (i32, i32) {
    %c0_i32 = arith.constant 0 : i32
    %c0_i32_0 = arith.constant 0 : i32
    %c0_i32_1 = arith.constant 0 : i32
    return %c0_i32, %c0_i32_0 : i32, i32
  }
  func.func @transform_2(%arg0: i32) -> (i32, i32) {
    %c0_i32 = arith.constant 0 : i32
    %c0_i32_0 = arith.constant 0 : i32
    %c0_i32_1 = arith.constant 0 : i32
    return %c0_i32, %c0_i32_0 : i32, i32
  }
  func.func @transform_3(%arg0: i32) -> (i32, i32) {
    %c0_i32 = arith.constant 0 : i32
    %c0_i32_0 = arith.constant 0 : i32
    %c0_i32_1 = arith.constant 0 : i32
    return %c0_i32, %c0_i32_0 : i32, i32
  }
  func.func @transform_4(%arg0: i32) -> (i32, i32) {
    %c0_i32 = arith.constant 0 : i32
    %c0_i32_0 = arith.constant 0 : i32
    %c0_i32_1 = arith.constant 0 : i32
    return %c0_i32, %c0_i32_0 : i32, i32
  }
  func.func @transform_5(%arg0: i32) -> (i32, i32) {
    %c0_i32 = arith.constant 0 : i32
    %c0_i32_0 = arith.constant 0 : i32
    %c0_i32_1 = arith.constant 0 : i32
    return %c0_i32, %c0_i32_0 : i32, i32
  }
  func.func @transform_6(%arg0: i32) -> (i32, i32) {
    %c0_i32 = arith.constant 0 : i32
    %c0_i32_0 = arith.constant 0 : i32
    %c0_i32_1 = arith.constant 0 : i32
    return %c0_i32, %c0_i32_0 : i32, i32
  }
  func.func @transform_7(%arg0: i32) -> (i32, i32) {
    %c0_i32 = arith.constant 0 : i32
    %c0_i32_0 = arith.constant 0 : i32
    %c0_i32_1 = arith.constant 0 : i32
    return %c0_i32, %c0_i32_0 : i32, i32
  }
  func.func @transform_8(%arg0: i32) -> (i32, i32) {
    %c0_i32 = arith.constant 0 : i32
    %c0_i32_0 = arith.constant 0 : i32
    %c0_i32_1 = arith.constant 0 : i32
    return %c0_i32, %c0_i32_0 : i32, i32
  }
}

</mosaic_0001>

<bundles_post_ra>
// kernel: tpu_custom_call.1
= control target key start
LH: loop header
LB: loop body
LE: loop exit
PB: predicated region body
PF: predicated region fallthrough
CT: control target
= control target key end

     0   :  { %13 = vsyncpa [#allocation3], 0  ;;  %s1174_s0 = inlined_call_operand.hbm [shape: bf16[48,48], index: 0, kind: input, shape index: {}]   ;;  %s1175_s1 = inlined_call_operand.hbm [shape: f32[48,128], index: 1, kind: input, shape index: {}]   ;;  %s1176_s2 = inlined_call_operand.hbm [shape: f32[128,128], index: 2, kind: input, shape index: {}]   ;;  %s1177_s3 = inlined_call_operand.vmem [shape: f32[1,128], index: 3, kind: input, shape index: {}]   ;;  %s1178_s4 = inlined_call_operand.hbm [shape: f32[128,128], index: 4, kind: input, shape index: {}]   ;;  %s1179_s5 = inlined_call_operand.vmem [shape: f32[1,128], index: 5, kind: input, shape index: {}]   ;;  %s1180_s6 = inlined_call_operand.hbm [shape: f32[128,128], index: 6, kind: input, shape index: {}]   ;;  %s1181_s7 = inlined_call_operand.vmem [shape: f32[1,128], index: 7, kind: input, shape index: {}]   ;;  %s1182_s8 = inlined_call_operand.hbm [shape: f32[48,128], index: 8, kind: output, shape index: {}]  }
   0x1   :  { %14 = vsyncpa [#allocation6], 0 }
   0x2   :  { %15 = vsyncpa [#allocation9], 0 }
   0x3   :  { %16 = vsyncpa [#allocation4], 0  ;;  %s1039_s27 = smov [#allocation5]  }
   0x4   :  { %s34_s28 = sshll.u32 %s1039_s27, 4  ;;  %s35_s28 = int_to_ptr.vmem [resolvable:$true] %s34_s28 }
   0x5   :  { %s919_s29 = scalar_lea.vmem %s35_s28, 768  ;;  %p924_p1 = scmp.lt.s32.totalorder %s35_s28, %s35_s28 }
   0x6   :  { %p920_p0 = scmp.ne.s32.totalorder %s35_s28, %s919_s29  ;;  %p925_p2 = scmp.lt.s32.totalorder %s919_s29, %s919_s29 }
   0x8   :  { %p926_p3 = por %p925_p2, %p924_p1 }
   0xa   :  { %p927_p4 = pnand %p926_p3, %p920_p0 }
   0xc   :  { %930 = shalt.err (!%p927_p4)
}
   0xd   :  { %s1040_s30 = smov 128   ;;  %s1041_s9 = smov 8  }
   0xe   :  { %40 = dma.hbm_to_vmem [thread:$0]  %s1175_s1, 768, %s35_s28, [#allocation6], %s1040_s30, %s1040_s30, %s1041_s9  }
   0xf   :  { %s1042_s12 = smov [#allocation8]   ;;  %s1043_s14 = smov [#allocation2]  }
  0x10   :  { %s60_s13 = sshll.u32 %s1042_s12, 4  ;;  %s22_s15 = sshll.u32 %s1043_s14, 4  ;;  %s61_s13 = int_to_ptr.vmem [resolvable:$true] %s60_s13  ;;  %s23_s15 = int_to_ptr.vmem [resolvable:$true] %s22_s15 }
  0x11   :  { %s939_s16 = scalar_lea.vmem %s61_s13, 2048  ;;  %p944_p6 = scmp.lt.s32.totalorder %s61_s13, %s61_s13 }
  0x12   :  { %p940_p5 = scmp.ne.s32.totalorder %s61_s13, %s939_s16  ;;  %p945_p7 = scmp.lt.s32.totalorder %s939_s16, %s939_s16 }
  0x14   :  { %p946_p8 = por %p945_p7, %p944_p6 }
  0x16   :  { %p947_p9 = pnand %p946_p8, %p940_p5 }
  0x18   :  { %950 = shalt.err (!%p947_p9)
}
  0x19   :  { %66 = dma.hbm_to_vmem [thread:$0]  %s1178_s4, 2048, %s61_s13, [#allocation9], %s1040_s30, %s1040_s30, %s1041_s9  }
  0x1a   :  { %s959_s1 = scalar_lea.vmem %s23_s15, 384  ;;  %p964_p11 = scmp.lt.s32.totalorder %s23_s15, %s23_s15 }
  0x1b   :  { %p960_p10 = scmp.ne.s32.totalorder %s23_s15, %s959_s1  ;;  %p965_p12 = scmp.lt.s32.totalorder %s959_s1, %s959_s1 }
  0x1d   :  { %p966_p13 = por %p965_p12, %p964_p11 }
  0x1f   :  { %p967_p0 = pnand %p966_p13, %p960_p10 }
  0x21   :  { %970 = shalt.err (!%p967_p0)
}
  0x22   :  { %s1044_s19 = smov 64   ;;  %s1045_s20 = smov 4  }
  0x23   :  { %28 = dma.hbm_to_vmem [thread:$0]  %s1174_s0, 384, %s23_s15, [#allocation3], %s1044_s19, %s1044_s19, %s1045_s20  }
  0x24   :  { %s1046_s23 = smov [#allocation7]   ;;  %s1047_s25 = smov [#allocation10]  }
  0x25   :  { %s46_s24 = sshll.u32 %s1046_s23, 4  ;;  %s74_s26 = sshll.u32 %s1047_s25, 4  ;;  %s47_s24 = int_to_ptr.vmem [resolvable:$true] %s46_s24  ;;  %s75_s26 = int_to_ptr.vmem [resolvable:$true] %s74_s26 }
  0x26   :  { %s979_s4 = scalar_lea.vmem %s47_s24, 2048  ;;  %p984_p2 = scmp.lt.s32.totalorder %s47_s24, %s47_s24 }
  0x27   :  { %p980_p1 = scmp.ne.s32.totalorder %s47_s24, %s979_s4  ;;  %p985_p3 = scmp.lt.s32.totalorder %s979_s4, %s979_s4 }
  0x29   :  { %p986_p4 = por %p985_p3, %p984_p2 }
  0x2b   :  { %p987_p5 = pnand %p986_p4, %p980_p1 }
  0x2d   :  { %990 = shalt.err (!%p987_p5)
}
  0x2e   :  { %52 = dma.hbm_to_vmem [thread:$0]  %s1176_s2, 2048, %s47_s24, [#allocation6], %s1040_s30, %s1040_s30, %s1041_s9  }
  0x2f   :  { %s999_s0 = scalar_lea.vmem %s75_s26, 2048  ;;  %p1004_p7 = scmp.lt.s32.totalorder %s75_s26, %s75_s26 }
  0x30   :  { %p1000_p6 = scmp.ne.s32.totalorder %s75_s26, %s999_s0  ;;  %p1005_p8 = scmp.lt.s32.totalorder %s999_s0, %s999_s0 }
  0x32   :  { %p1006_p9 = por %p1005_p8, %p1004_p7 }
  0x34   :  { %p1007_p10 = pnand %p1006_p9, %p1000_p6 }
  0x36   :  { %1010 = shalt.err (!%p1007_p10)
}
  0x37   :  { %80 = dma.hbm_to_vmem [thread:$0]  %s1180_s6, 2048, %s75_s26, [#allocation9], %s1040_s30, %s1040_s30, %s1041_s9  }
  0x38   :  { %1031 = dma.done.wait [#allocation3], 384  }
  0x39   :  { %1032 = vsyncadd [#allocation3], 4294966912 }
  0x3a   :  { %1033 = dma.done.wait [#allocation6], 2816  }
  0x3b   :  { %1034 = vsyncadd [#allocation6], 4294964480 }
  0x3c   :  { %1035 = dma.done.wait [#allocation9], 4096  }
  0x3d   :  { %1036 = vsyncadd [#allocation9], 4294963200  ;;  %v126_v0 = vld [vmem:[#allocation7 + $0x78] sm:$0xff]  ;;  %v125_v1 = vld [vmem:[#allocation7 + $0x70] sm:$0xff]  ;;  %v1048_v22 = vmov 0.0   ;;  %vm1049_vm0 = vmmov 0  }
  0x3e   :  { %737 = vmatprep.subr.mxu0 %v126_v0  ;;  %v124_v2 = vld [vmem:[#allocation7 + $0x68] sm:$0xff]  ;;  %v123_v3 = vld [vmem:[#allocation7 + $0x60] sm:$0xff]  ;;  %v105_v4 = vld [vmem:[#allocation5] sm:$0xff]  ;;  %778 = vmatprep.subr.bf16.mxu1 %v1048_v22  ;;  %vm247_vm1 = vcmask 392192   ;;  %s1050_s13 = smov [#allocation11]  }
  0x3f   :  { %738 = vmatpush3.msra.mxu0 %v126_v0  ;;  %v122_v5 = vld [vmem:[#allocation7 + $0x58] sm:$0xff]  ;;  %769 = vmatprep.mubr.f32.mxu0 %v105_v4  ;;  %v121_v6 = vld [vmem:[#allocation7 + $0x50] sm:$0xff]  ;;  %v120_v7 = vld [vmem:[#allocation7 + $0x48] sm:$0xff]  ;;  %s633_s14 = sshll.u32 %s1050_s13, 4  ;;  %s634_s14 = int_to_ptr.vmem [resolvable:$true] %s633_s14 }
  0x40   :  { %739 = vmatprep.subr.mxu0 %v125_v1  ;;  %v119_v8 = vld [vmem:[#allocation7 + $0x40] sm:$0xff]  ;;  %v118_v9 = vld [vmem:[#allocation7 + $0x38] sm:$0xff]  ;;  %v117_v10 = vld [vmem:[#allocation7 + $0x30] sm:$0xff]  ;;  %784 = vmatprep.mubr.msk.bf16.mxu1 %vm1049_vm0, %v1048_v22  ;;  %p1016_p12 = scmp.lt.s32.totalorder %s634_s14, %s634_s14 }
  0x41   :  { %740 = vmatpush3.msra.mxu0 %v125_v1  ;;  %v116_v11 = vld [vmem:[#allocation7 + $0x28] sm:$0xff]  ;;  %v115_v12 = vld [vmem:[#allocation7 + $0x20] sm:$0xff]  ;;  %v114_v13 = vld [vmem:[#allocation7 + $0x18] sm:$0xff] }
  0x42   :  { %741 = vmatprep.subr.mxu0 %v124_v2  ;;  %v113_v14 = vld [vmem:[#allocation7 + $0x10] sm:$0xff]  ;;  %v112_v15 = vld [vmem:[#allocation7 + $0x8] sm:$0xff]  ;;  %v111_v16 = vld [vmem:[#allocation7] sm:$0xff] }
  0x43   :  { %742 = vmatpush3.msra.mxu0 %v124_v2  ;;  %v106_v17 = vld [vmem:[#allocation5 + $0x8] sm:$0xff]  ;;  %v107_v18 = vld [vmem:[#allocation5 + $0x10] sm:$0xff]  ;;  %v108_v19 = vld [vmem:[#allocation5 + $0x18] sm:$0xff] }
  0x44   :  { %743 = vmatprep.subr.mxu0 %v123_v3  ;;  %v109_v20 = vld [vmem:[#allocation5 + $0x20] sm:$0xff]  ;;  %v110_v21 = vld [vmem:[#allocation5 + $0x28] sm:$0xff]  ;;  %v1135_v33 = vld [vmem:[#allocation2 + $0x8] sm:$0xff]  }
  0x45   :  { %744 = vmatpush3.msra.mxu0 %v123_v3  ;;  %v1128_v32 = vld [vmem:[#allocation2] sm:$0xff]   ;;  %v1141_v34 = vld [vmem:[#allocation2 + $0x10] sm:$0xff]   ;;  %v394_v36 = vld [vmem:[#allocation8 + $0x70] sm:$0xff] }
  0x46   :  { %745 = vmatprep.subr.mxu0 %v122_v5  ;;  %v395_v35 = vld [vmem:[#allocation8 + $0x78] sm:$0xff]  ;;  %v393_v37 = vld [vmem:[#allocation8 + $0x68] sm:$0xff]  ;;  %v392_v38 = vld [vmem:[#allocation8 + $0x60] sm:$0xff] }
  0x47   :  { %746 = vmatpush3.msra.mxu0 %v122_v5  ;;  %v391_v39 = vld [vmem:[#allocation8 + $0x58] sm:$0xff]  ;;  %v390_v40 = vld [vmem:[#allocation8 + $0x50] sm:$0xff]  ;;  %v389_v41 = vld [vmem:[#allocation8 + $0x48] sm:$0xff] }
  0x48   :  { %747 = vmatprep.subr.mxu0 %v121_v6  ;;  %v388_v42 = vld [vmem:[#allocation8 + $0x40] sm:$0xff]  ;;  %v387_v43 = vld [vmem:[#allocation8 + $0x38] sm:$0xff]  ;;  %v386_v44 = vld [vmem:[#allocation8 + $0x30] sm:$0xff] }
  0x49   :  { %748 = vmatpush3.msra.mxu0 %v121_v6  ;;  %v385_v45 = vld [vmem:[#allocation8 + $0x28] sm:$0xff]  ;;  %v384_v46 = vld [vmem:[#allocation8 + $0x20] sm:$0xff]  ;;  %v383_v47 = vld [vmem:[#allocation8 + $0x18] sm:$0xff] }
  0x4a   :  { %749 = vmatprep.subr.mxu0 %v120_v7  ;;  %v382_v48 = vld [vmem:[#allocation8 + $0x10] sm:$0xff]  ;;  %v647_v58 = vld [vmem:[%s1177_s3] ss:$0 sm:$0xff] }
  0x4b   :  { %750 = vmatpush3.msra.mxu0 %v120_v7 }
  0x4c   :  { %751 = vmatprep.subr.mxu0 %v119_v8 }
  0x4d   :  { %752 = vmatpush3.msra.mxu0 %v119_v8 }
  0x4e   :  { %753 = vmatprep.subr.mxu0 %v118_v9 }
  0x4f   :  { %754 = vmatpush3.msra.mxu0 %v118_v9 }
  0x50   :  { %755 = vmatprep.subr.mxu0 %v117_v10 }
  0x51   :  { %756 = vmatpush3.msra.mxu0 %v117_v10 }
  0x52   :  { %757 = vmatprep.subr.mxu0 %v116_v11 }
  0x53   :  { %758 = vmatpush3.msra.mxu0 %v116_v11 }
  0x54   :  { %759 = vmatprep.subr.mxu0 %v115_v12 }
  0x55   :  { %760 = vmatpush3.msra.mxu0 %v115_v12 }
  0x56   :  { %761 = vmatprep.subr.mxu0 %v114_v13 }
  0x57   :  { %762 = vmatpush3.msra.mxu0 %v114_v13  ;;  %v381_v13 = vld [vmem:[#allocation8 + $0x8] sm:$0xff] }
  0x58   :  { %763 = vmatprep.subr.mxu0 %v113_v14 }
  0x59   :  { %764 = vmatpush3.msra.mxu0 %v113_v14  ;;  %v380_v14 = vld [vmem:[#allocation8] sm:$0xff] }
  0x5a   :  { %765 = vmatprep.subr.mxu0 %v112_v15 }
  0x5b   :  { %766 = vmatpush3.msra.mxu0 %v112_v15  ;;  %v519_v15 = vld [vmem:[#allocation10 + $0x78] sm:$0xff] }
  0x5c   :  { %767 = vmatprep.subr.mxu0 %v111_v16 }
  0x5d   :  { %768 = vmatpush3.msra.mxu0 %v111_v16  ;;  %v518_v16 = vld [vmem:[#allocation10 + $0x70] sm:$0xff] }
  0x5e   :  { %770 = vmatmul.mubr.f32.vlgmr.msra.gmra.mxu0 %v106_v17  ;;  %814 = vmatprep.subr.mxu0 %v395_v35  ;;  %v517_v17 = vld [vmem:[#allocation10 + $0x68] sm:$0xff] }
  0x5f   :  { %772 = vmatprep.mubr.f32.mxu0 %v107_v18  ;;  %815 = vmatpush3.msra.mxu0 %v395_v35  ;;  %v516_v18 = vld [vmem:[#allocation10 + $0x60] sm:$0xff] }
  0x60   :  { %816 = vmatprep.subr.mxu0 %v394_v36 }
  0x61   :  { %817 = vmatpush3.msra.mxu0 %v394_v36 }
  0x62   :  { %773 = vmatmul.mubr.f32.gmra.mxu0 %v108_v19  ;;  %818 = vmatprep.subr.mxu0 %v393_v37  ;;  %v515_v19 = vld [vmem:[#allocation10 + $0x58] sm:$0xff] }
  0x63   :  { %775 = vmatprep.mubr.f32.mxu0 %v109_v20  ;;  %819 = vmatpush3.msra.mxu0 %v393_v37  ;;  %v514_v20 = vld [vmem:[#allocation10 + $0x50] sm:$0xff] }
  0x64   :  { %820 = vmatprep.subr.mxu0 %v392_v38 }
  0x65   :  { %821 = vmatpush3.msra.mxu0 %v392_v38 }
  0x66   :  { %776 = vmatmul.mubr.f32.gmra.mxu0 %v110_v21  ;;  %822 = vmatprep.subr.mxu0 %v391_v39  ;;  %v513_v21 = vld [vmem:[#allocation10 + $0x48] sm:$0xff] }
  0x67   :  { %823 = vmatpush3.msra.mxu0 %v391_v39  ;;  %v507_v39 = vld [vmem:[#allocation10 + $0x18] sm:$0xff] }
  0x68   :  { %824 = vmatprep.subr.mxu0 %v390_v40 }
  0x69   :  { %825 = vmatpush3.msra.mxu0 %v390_v40  ;;  %v506_v40 = vld [vmem:[#allocation10 + $0x10] sm:$0xff] }
  0x6a   :  { %826 = vmatprep.subr.mxu0 %v389_v41 }
  0x6b   :  { %827 = vmatpush3.msra.mxu0 %v389_v41  ;;  %v505_v41 = vld [vmem:[#allocation10 + $0x8] sm:$0xff] }
  0x6c   :  { %828 = vmatprep.subr.mxu0 %v388_v42 }
  0x6d   :  { %829 = vmatpush3.msra.mxu0 %v388_v42  ;;  %v504_v42 = vld [vmem:[#allocation10] sm:$0xff] }
  0x6e   :  { %830 = vmatprep.subr.mxu0 %v387_v43 }
  0x6f   :  { %831 = vmatpush3.msra.mxu0 %v387_v43  ;;  %v657_v43 = vld [vmem:[%s1179_s5] ss:$0 sm:$0xff] }
  0x70   :  { %832 = vmatprep.subr.mxu0 %v386_v44 }
  0x71   :  { %833 = vmatpush3.msra.mxu0 %v386_v44 }
  0x72   :  { %834 = vmatprep.subr.mxu0 %v385_v45 }
  0x73   :  { %835 = vmatpush3.msra.mxu0 %v385_v45 }
  0x74   :  { %836 = vmatprep.subr.mxu0 %v384_v46 }
  0x75   :  { %837 = vmatpush3.msra.mxu0 %v384_v46 }
  0x76   :  { %838 = vmatprep.subr.mxu0 %v383_v47 }
  0x77   :  { %839 = vmatpush3.msra.mxu0 %v383_v47 }
  0x78   :  { %840 = vmatprep.subr.mxu0 %v382_v48 }
  0x79   :  { %841 = vmatpush3.msra.mxu0 %v382_v48 }
  0x7a   :  { %842 = vmatprep.subr.mxu0 %v381_v13 }
  0x7b   :  { %843 = vmatpush3.msra.mxu0 %v381_v13 }
  0x7c   :  { %844 = vmatprep.subr.mxu0 %v380_v14 }
  0x7d   :  { %845 = vmatpush3.msra.mxu0 %v380_v14 }
 0x11e   :  { %v771_v23 = vpop.f32.mrf.mxu0 }
 0x120   :  { %v193_v24 = vpop.f32.mrf.mxu0 }
 0x121   :  { %v222_v31 = vpack.c.bf16 %v771_v23, %v193_v24  ;;  %v511_v23 = vld [vmem:[#allocation10 + $0x38] sm:$0xff]  ;;  %v510_v24 = vld [vmem:[#allocation10 + $0x30] sm:$0xff] }
 0x122   :  { %v774_v25 = vpop.f32.mrf.mxu0 }
 0x124   :  { %v203_v26 = vpop.f32.mrf.mxu0 }
 0x125   :  { %v223_v30 = vpack.c.bf16 %v774_v25, %v203_v26  ;;  %v509_v25 = vld [vmem:[#allocation10 + $0x28] sm:$0xff]  ;;  %v508_v26 = vld [vmem:[#allocation10 + $0x20] sm:$0xff] }
 0x126   :  { %v777_v27 = vpop.f32.mrf.mxu0 }
 0x128   :  { %v213_v28 = vpop.f32.mrf.mxu0 }
 0x129   :  { %v224_v29 = vpack.c.bf16 %v777_v27, %v213_v28 }
 0x12b   :  { %779 = vmatpush3.bf16.msra.mxu1 %v224_v29 }
 0x12c   :  { %780 = vmatprep.subr.bf16.mxu1 %v1048_v22 }
 0x12f   :  { %781 = vmatpush3.bf16.msra.mxu1 %v223_v30 }
 0x130   :  { %782 = vmatprep.subr.bf16.mxu1 %v1048_v22 }
 0x133   :  { %783 = vmatpush3.bf16.msra.mxu1 %v222_v31 }
 0x134   :  { %796 = vmatprep.subr.bf16.mxu1 %v1048_v22 }
 0x136   :  { %785 = vmatmul.mubr.msk.bf16.vlgmr.msra.gmra.mxu1 %vm247_vm1, %v1128_v32 }
 0x137   :  { %788 = vmatprep.mubr.msk.bf16.mxu1 %vm1049_vm0, %v1048_v22 }
 0x13e   :  { %789 = vmatmul.mubr.msk.bf16.gmra.mxu1 %vm247_vm1, %v1135_v33 }
 0x13f   :  { %792 = vmatprep.mubr.msk.bf16.mxu1 %vm1049_vm0, %v1048_v22 }
 0x146   :  { %793 = vmatmul.mubr.msk.bf16.gmra.mxu1 %vm247_vm1, %v1141_v34 }
 0x147   :  { %802 = vmatprep.mubr.msk.bf16.mxu1 %vm1049_vm0, %v1048_v22 }
 0x1f6   :  { %v291_v49 = vpop.f32.mrf.mxu1 }
 0x1f7   :  { %v292_v7 = vadd.f32 %v647_v58, %v291_v49 }
 0x1f8   :  { %v786_v50 = vpop.f32.mrf.mxu1 }
 0x1f9   :  { %v314_v11 = vmax.f32 %v292_v7, 0.0 }
 0x1fa   :  { %v294_v51 = vpop.f32.mrf.mxu1 }
 0x1fb   :  { %v295_v4 = vadd.f32 %v647_v58, %v294_v51 }
 0x1fc   :  { %v787_v52 = vpop.f32.mrf.mxu1 }
 0x1fd   :  { %v315_v9 = vmax.f32 %v295_v4, 0.0 }
 0x1fe   :  { %v299_v53 = vpop.f32.mrf.mxu1 }
 0x1ff   :  { %v300_v1 = vadd.f32 %v647_v58, %v299_v53  ;;  %v320_v12 = vpack.c.bf16 %v315_v9, %v314_v11 }
 0x200   :  { %v790_v54 = vpop.f32.mrf.mxu1 }
 0x201   :  { %v316_v8 = vmax.f32 %v300_v1, 0.0 }
 0x202   :  { %v302_v55 = vpop.f32.mrf.mxu1 }
 0x203   :  { %v303_v62 = vadd.f32 %v647_v58, %v302_v55 }
 0x204   :  { %v791_v56 = vpop.f32.mrf.mxu1 }
 0x205   :  { %v317_v5 = vmax.f32 %v303_v62, 0.0  ;;  %v658_v62 = vld [vmem:[%s1181_s7] ss:$0 sm:$0xff]  ;;  %s1011_s7 = scalar_lea.vmem %s634_s14, 768 }
 0x206   :  { %v307_v57 = vpop.f32.mrf.mxu1  ;;  %p1012_p11 = scmp.ne.s32.totalorder %s634_s14, %s1011_s7  ;;  %p1017_p13 = scmp.lt.s32.totalorder %s1011_s7, %s1011_s7 }
 0x207   :  { %v308_v60 = vadd.f32 %v647_v58, %v307_v57  ;;  %v321_v10 = vpack.c.bf16 %v317_v5, %v316_v8 }
 0x208   :  { %v794_v59 = vpop.f32.mrf.mxu1  ;;  %p1018_p0 = por %p1017_p13, %p1016_p12 }
 0x209   :  { %v318_v2 = vmax.f32 %v308_v60, 0.0 }
 0x20a   :  { %v310_v61 = vpop.f32.mrf.mxu1  ;;  %p1019_p1 = pnand %p1018_p0, %p1012_p11 }
 0x20b   :  { %v311_v63 = vadd.f32 %v647_v58, %v310_v61 }
 0x20c   :  { %v795_v0 = vpop.f32.mrf.mxu1 }
 0x20d   :  { %v319_v3 = vmax.f32 %v311_v63, 0.0 }
 0x20f   :  { %v322_v6 = vpack.c.bf16 %v319_v3, %v318_v2 }
 0x211   :  { %797 = vmatpush3.bf16.msra.mxu1 %v322_v6 }
 0x212   :  { %798 = vmatprep.subr.bf16.mxu1 %v1048_v22 }
 0x215   :  { %799 = vmatpush3.bf16.msra.mxu1 %v321_v10 }
 0x216   :  { %800 = vmatprep.subr.bf16.mxu1 %v1048_v22 }
 0x219   :  { %801 = vmatpush3.bf16.msra.mxu1 %v320_v12 }
 0x21a   :  { %855 = vmatprep.subr.mxu1 %v519_v15 }
 0x21c   :  { %803 = vmatmul.mubr.msk.bf16.vlgmr.msra.gmra.mxu1 %vm247_vm1, %v1128_v32 }
 0x21d   :  { %806 = vmatprep.mubr.msk.bf16.mxu1 %vm1049_vm0, %v1048_v22  ;;  %856 = vmatpush3.msra.mxu1 %v519_v15 }
 0x21e   :  { %857 = vmatprep.subr.mxu1 %v518_v16 }
 0x21f   :  { %858 = vmatpush3.msra.mxu1 %v518_v16 }
 0x220   :  { %859 = vmatprep.subr.mxu1 %v517_v17 }
 0x221   :  { %860 = vmatpush3.msra.mxu1 %v517_v17 }
 0x222   :  { %861 = vmatprep.subr.mxu1 %v516_v18 }
 0x223   :  { %862 = vmatpush3.msra.mxu1 %v516_v18 }
 0x224   :  { %807 = vmatmul.mubr.msk.bf16.gmra.mxu1 %vm247_vm1, %v1135_v33  ;;  %863 = vmatprep.subr.mxu1 %v515_v19 }
 0x225   :  { %810 = vmatprep.mubr.msk.bf16.mxu1 %vm1049_vm0, %v1048_v22  ;;  %864 = vmatpush3.msra.mxu1 %v515_v19  ;;  %v512_v22 = vld [vmem:[#allocation10 + $0x40] sm:$0xff] }
 0x226   :  { %865 = vmatprep.subr.mxu1 %v514_v20 }
 0x227   :  { %866 = vmatpush3.msra.mxu1 %v514_v20 }
 0x228   :  { %867 = vmatprep.subr.mxu1 %v513_v21 }
 0x229   :  { %868 = vmatpush3.msra.mxu1 %v513_v21 }
 0x22a   :  { %869 = vmatprep.subr.mxu1 %v512_v22 }
 0x22b   :  { %870 = vmatpush3.msra.mxu1 %v512_v22 }
 0x22c   :  { %811 = vmatmul.mubr.msk.bf16.gmra.mxu1 %vm247_vm1, %v1141_v34  ;;  %871 = vmatprep.subr.mxu1 %v511_v23 }
 0x22d   :  { %872 = vmatpush3.msra.mxu1 %v511_v23 }
 0x22e   :  { %873 = vmatprep.subr.mxu1 %v510_v24 }
 0x22f   :  { %874 = vmatpush3.msra.mxu1 %v510_v24 }
 0x230   :  { %875 = vmatprep.subr.mxu1 %v509_v25 }
 0x231   :  { %876 = vmatpush3.msra.mxu1 %v509_v25 }
 0x232   :  { %877 = vmatprep.subr.mxu1 %v508_v26 }
 0x233   :  { %878 = vmatpush3.msra.mxu1 %v508_v26 }
 0x234   :  { %879 = vmatprep.subr.mxu1 %v507_v39 }
 0x235   :  { %880 = vmatpush3.msra.mxu1 %v507_v39 }
 0x236   :  { %881 = vmatprep.subr.mxu1 %v506_v40 }
 0x237   :  { %882 = vmatpush3.msra.mxu1 %v506_v40 }
 0x238   :  { %883 = vmatprep.subr.mxu1 %v505_v41 }
 0x239   :  { %884 = vmatpush3.msra.mxu1 %v505_v41 }
 0x23a   :  { %885 = vmatprep.subr.mxu1 %v504_v42 }
 0x23b   :  { %886 = vmatpush3.msra.mxu1 %v504_v42 }
 0x2dc   :  { %v357_v27 = vpop.f32.mrf.mxu1 }
 0x2dd   :  { %846 = vmatprep.mubr.f32.mxu0 %v357_v27 }
 0x2de   :  { %v804_v28 = vpop.f32.mrf.mxu1 }
 0x2e0   :  { %v360_v29 = vpop.f32.mrf.mxu1 }
 0x2e1   :  { %847 = vmatmul.mubr.f32.vlgmr.msra.gmra.mxu0 %v360_v29 }
 0x2e2   :  { %v805_v30 = vpop.f32.mrf.mxu1 }
 0x2e4   :  { %v365_v31 = vpop.f32.mrf.mxu1 }
 0x2e5   :  { %849 = vmatprep.mubr.f32.mxu0 %v365_v31 }
 0x2e6   :  { %v808_v32 = vpop.f32.mrf.mxu1 }
 0x2e8   :  { %v368_v33 = vpop.f32.mrf.mxu1 }
 0x2e9   :  { %850 = vmatmul.mubr.f32.gmra.mxu0 %v368_v33 }
 0x2ea   :  { %v809_v34 = vpop.f32.mrf.mxu1 }
 0x2ec   :  { %v373_v35 = vpop.f32.mrf.mxu1 }
 0x2ed   :  { %852 = vmatprep.mubr.f32.mxu0 %v373_v35 }
 0x2ee   :  { %v812_v36 = vpop.f32.mrf.mxu1 }
 0x2f0   :  { %v376_v37 = vpop.f32.mrf.mxu1 }
 0x2f1   :  { %853 = vmatmul.mubr.f32.gmra.mxu0 %v376_v37 }
 0x2f2   :  { %v813_v38 = vpop.f32.mrf.mxu1 }
 0x3a1   :  { %v848_v44 = vpop.f32.mrf.mxu0 }
 0x3a2   :  { %v475_v45 = vadd.f32 %v848_v44, %v657_v43 }
 0x3a3   :  { %v469_v46 = vpop.f32.mrf.mxu0 }
 0x3a4   :  { %v470_v47 = vadd.f32 %v657_v43, %v469_v46  ;;  %v499_v49 = vmax.f32 %v475_v45, 0.0 }
 0x3a6   :  { %v498_v48 = vmax.f32 %v470_v47, 0.0 }
 0x3a8   :  { %887 = vmatprep.mubr.f32.mxu1 %v498_v48 }
 0x3a9   :  { %v851_v50 = vpop.f32.mrf.mxu0  ;;  %888 = vmatmul.mubr.f32.vlgmr.msra.gmra.mxu1 %v499_v49 }
 0x3aa   :  { %v485_v51 = vadd.f32 %v851_v50, %v657_v43 }
 0x3ab   :  { %v479_v52 = vpop.f32.mrf.mxu0 }
 0x3ac   :  { %v480_v53 = vadd.f32 %v657_v43, %v479_v52  ;;  %v501_v55 = vmax.f32 %v485_v51, 0.0 }
 0x3ae   :  { %v500_v54 = vmax.f32 %v480_v53, 0.0 }
 0x3b0   :  { %890 = vmatprep.mubr.f32.mxu1 %v500_v54 }
 0x3b1   :  { %v854_v56 = vpop.f32.mrf.mxu0  ;;  %891 = vmatmul.mubr.f32.gmra.mxu1 %v501_v55 }
 0x3b2   :  { %v495_v57 = vadd.f32 %v854_v56, %v657_v43 }
 0x3b3   :  { %v489_v58 = vpop.f32.mrf.mxu0 }
 0x3b4   :  { %v490_v59 = vadd.f32 %v657_v43, %v489_v58  ;;  %v503_v61 = vmax.f32 %v495_v57, 0.0 }
 0x3b6   :  { %v502_v60 = vmax.f32 %v490_v59, 0.0 }
 0x3b8   :  { %893 = vmatprep.mubr.f32.mxu1 %v502_v60 }
 0x3b9   :  { %894 = vmatmul.mubr.f32.gmra.mxu1 %v503_v61 }
 0x469   :  { %v889_v63 = vpop.f32.mrf.mxu1 }
 0x46a   :  { %v599_v0 = vadd.f32 %v889_v63, %v658_v62 }
 0x46b   :  { %v593_v1 = vpop.f32.mrf.mxu1 }
 0x46c   :  { %623 = vst [vmem:[#allocation11 + $0x8] sm:$0xff] %v599_v0  ;;  %v594_v2 = vadd.f32 %v658_v62, %v593_v1 }
 0x46e   :  { %622 = vst [vmem:[#allocation11] sm:$0xff] %v594_v2 }
 0x471   :  { %v892_v3 = vpop.f32.mrf.mxu1 }
 0x472   :  { %v609_v4 = vadd.f32 %v892_v3, %v658_v62 }
 0x473   :  { %v603_v5 = vpop.f32.mrf.mxu1 }
 0x474   :  { %625 = vst [vmem:[#allocation11 + $0x18] sm:$0xff] %v609_v4  ;;  %v604_v6 = vadd.f32 %v658_v62, %v603_v5 }
 0x476   :  { %624 = vst [vmem:[#allocation11 + $0x10] sm:$0xff] %v604_v6 }
 0x479   :  { %v895_v7 = vpop.f32.mrf.mxu1 }
 0x47a   :  { %v619_v8 = vadd.f32 %v895_v7, %v658_v62 }
 0x47b   :  { %v613_v9 = vpop.f32.mrf.mxu1 }
 0x47c   :  { %627 = vst [vmem:[#allocation11 + $0x28] sm:$0xff] %v619_v8  ;;  %v614_v10 = vadd.f32 %v658_v62, %v613_v9 }
 0x47e   :  { %626 = vst [vmem:[#allocation11 + $0x20] sm:$0xff] %v614_v10 }
 0x47f   :  { %1022 = shalt.err (!%p1019_p1)
}
 0x480   :  { %639 = dma.vmem_to_hbm [thread:$0]  %s634_s14, 768, %s1182_s8, [#allocation4], %s1040_s30, %s1040_s30, %s1041_s9  }
 0x481   :  { %1037 = dma.done.wait [#allocation4], 768  }
 0x482   :  { %1038 = vsyncadd [#allocation4], 4294966528 }
 0x483   :  { %643 = vsyncpa [#allocation3], 1 }
 0x484   :  { %644 = vsyncpa [#allocation6], 1 }
 0x485   :  { %645 = vsyncpa [#allocation9], 1 }
 0x486   :  { %646 = vsyncpa [#allocation4], 1 }

</bundles_post_ra>
